<compile_context>
chip_gen: v7x
topology: tpu7x:2x2x1
jax: 0.10.0
libtpu: 0.0.40
codegen_flags: <defaults>
</compile_context>

<pallas_src>
import functools

import jax
import jax.numpy as jnp
from jax import lax
from jax.experimental import pallas as pl
from jax.experimental.pallas import tpu as pltpu

_LANES = 512             # lane-dense block width (multiple of 128)
_MAX_BLOCK_ROWS = 1024   # 1024 x 512 f32 = 2 MiB / input / step (fits v5e VMEM default)
_NUM_CORE_SPLITS = 2     # leading "parallel" grid axis (v7x megacore)


def _round_up(a: int, b: int) -> int:
    return pl.cdiv(a, b) * b


def _sublane_align(dtype) -> int:
    # Minimum second-to-last block multiple for packed dtypes:
    # f32 -> 8, bf16/f16 -> 16, int8/bool/fp8 -> 32.
    return max(8, 32 // jnp.dtype(dtype).itemsize)


def _dice_sums_kernel(x_ref, t_ref, o_xt_ref, o_s_ref, acc_xt, acc_s, *,
                      in_sigmoid: bool, nb_inner: int, nb_total: int,
                      block_rows: int, last_rows: int):
    """Accumulates sum(x*t) and sum(x+t) into (8, 512) VMEM accumulators.

    Grid: (num_core_splits, nb_inner).  Each core-split owns a contiguous range
    of row-blocks; the inner axis is the reduction ("arbitrary") axis.
    """
    c = pl.program_id(0)
    b = pl.program_id(1)
    g = c * nb_inner + b          # global row-block index

    @pl.when(b == 0)
    def _():
        acc_xt[...] = jnp.zeros_like(acc_xt)
        acc_s[...] = jnp.zeros_like(acc_s)

    @pl.when(g < nb_total)        # skip duplicate (clamped) trailing blocks
    def _():
        x = x_ref[...].astype(jnp.float32)
        t = t_ref[...].astype(jnp.float32)
        if in_sigmoid:
            x = jax.nn.sigmoid(x)
        if last_rows != block_rows:
            # Mask the ragged rows of the final (partial) row-block.  Applied
            # after the sigmoid so masked lanes contribute exactly 0.
            limit = jnp.where(g == nb_total - 1, last_rows, block_rows)
            row_ids = lax.broadcasted_iota(jnp.int32, x.shape, 0)
            keep = row_ids < limit
            x = jnp.where(keep, x, 0.0)
            t = jnp.where(keep, t, 0.0)
        prod = x * t
        s = x + t
        if block_rows > 8:
            # Fold sublane groups into the (8, 512) accumulators: the reshape
            # only splits the major dim (layout-preserving), the sum over the
            # leading axis is pure element-wise VALU work (no XLU).
            g8 = block_rows // 8
            acc_xt[...] += jnp.sum(prod.reshape(g8, 8, prod.shape[-1]), axis=0)
            acc_s[...] += jnp.sum(s.reshape(g8, 8, s.shape[-1]), axis=0)
        else:
            acc_xt[...] += prod
            acc_s[...] += s

    @pl.when(b == pl.num_programs(1) - 1)
    def _():
        # Lane-dense (8, 512) output blocks; final cross-lane reduce is done
        # once in the wrapper.
        o_xt_ref[...] = acc_xt[...]
        o_s_ref[...] = acc_s[...]


def dice_loss(inputs, targets, smooth=1.0, in_sigmoid: bool = False):
    """Pallas-backed equivalent of DiceLoss.forward(inputs, targets, smooth)."""
    x = inputs.reshape(-1)
    t = targets.reshape(-1)
    n = x.shape[0]
    cols = _LANES
    rows = n // cols                     # full 512-wide rows handled in-kernel
    align = max(_sublane_align(x.dtype), _sublane_align(t.dtype))
    use_kernel = rows >= align
    kernel_elems = rows * cols if use_kernel else 0

    intersection = jnp.float32(0.0)
    denom = jnp.float32(0.0)

    if kernel_elems < n:
        # Ragged tail (< one 512-wide row) and/or tiny inputs: plain jnp.
        xt = x[kernel_elems:].astype(jnp.float32)
        tt = t[kernel_elems:].astype(jnp.float32)
        if in_sigmoid:
            xt = jax.nn.sigmoid(xt)
        intersection = intersection + jnp.sum(xt * tt)
        denom = denom + jnp.sum(xt) + jnp.sum(tt)

    if use_kernel:
        block_rows = min(_MAX_BLOCK_ROWS,
                         _round_up(pl.cdiv(rows, _NUM_CORE_SPLITS), align))
        nb_total = pl.cdiv(rows, block_rows)
        num_splits = min(_NUM_CORE_SPLITS, nb_total)
        nb_inner = pl.cdiv(nb_total, num_splits)
        last_rows = rows - (nb_total - 1) * block_rows

        # Free reshape when n % 512 == 0; otherwise a cheap prefix slice
        # (still no padded copies of the inputs are written to HBM).
        x2 = x[:kernel_elems].reshape(rows, cols)
        t2 = t[:kernel_elems].reshape(rows, cols)

        def in_index_map(c, b):
            g = c * nb_inner + b
            # Clamp so trailing (skipped) iterations fetch a valid block.
            return (jnp.minimum(g, nb_total - 1), 0)

        in_spec = pl.BlockSpec((block_rows, cols), in_index_map)
        out_spec = pl.BlockSpec((8, cols), lambda c, b: (c, 0))

        kernel = functools.partial(
            _dice_sums_kernel, in_sigmoid=in_sigmoid, nb_inner=nb_inner,
            nb_total=nb_total, block_rows=block_rows, last_rows=last_rows)

        out_xt, out_s = pl.pallas_call(
            kernel,
            out_shape=(
                jax.ShapeDtypeStruct((num_splits * 8, cols), jnp.float32),
                jax.ShapeDtypeStruct((num_splits * 8, cols), jnp.float32),
            ),
            grid_spec=pltpu.PrefetchScalarGridSpec(
                num_scalar_prefetch=0,
                grid=(num_splits, nb_inner),
                in_specs=[in_spec, in_spec],
                out_specs=[out_spec, out_spec],
                scratch_shapes=[
                    pltpu.VMEM((8, cols), jnp.float32),
                    pltpu.VMEM((8, cols), jnp.float32),
                ],
            ),
            compiler_params=pltpu.CompilerParams(
                dimension_semantics=("parallel", "arbitrary")),
        )(x2, t2)

        intersection = intersection + jnp.sum(out_xt)
        denom = denom + jnp.sum(out_s)

    dice = (2.0 * intersection + smooth) / (denom + smooth)
    return 1.0 - dice


def _dice_loss_ref(inputs, targets, smooth=1.0, in_sigmoid=False):
    x = inputs.reshape(-1).astype(jnp.float32)
    t = targets.reshape(-1).astype(jnp.float32)
    if in_sigmoid:
        x = jax.nn.sigmoid(x)
    inter = jnp.sum(x * t)
    return 1.0 - (2.0 * inter + smooth) / (jnp.sum(x) + jnp.sum(t) + smooth)


if __name__ == "__main__":
    key = jax.random.PRNGKey(0)
    k1, k2, k3, k4, k5, k6 = jax.random.split(key, 6)

    cases = []

    # A) NCHW probabilities + f32 binary targets; n % 512 == 0 (free reshape).
    x_a = jax.random.uniform(k1, (2, 4, 64, 64), dtype=jnp.float32)
    y_a = (jax.random.uniform(k2, (2, 4, 64, 64)) > 0.5).astype(jnp.float32)
    cases.append((x_a, y_a))

    # B) Logits + narrow-dtype (bf16) binary targets; ragged last row-block.
    x_b = jax.random.normal(k3, (2, 3, 48, 48), dtype=jnp.float32)
    y_b = (jax.random.uniform(k4, (2, 3, 48, 48)) > 0.5).astype(jnp.bfloat16)
    cases.append((x_b, y_b))

    # C) Odd shape: ragged tail (<512 elems) + partial last block masking.
    x_c = jax.random.uniform(k5, (1, 3, 41, 53), dtype=jnp.float32)
    y_c = (jax.random.uniform(k6, (1, 3, 41, 53)) > 0.5).astype(jnp.float32)
    cases.append((x_c, y_c))

    ok = True
    for x, y in cases:
        for in_sig in (False, True):
            out = jax.block_until_ready(
                dice_loss(x, y, smooth=1.0, in_sigmoid=in_sig))
            ref = jax.block_until_ready(_dice_loss_ref(x, y, 1.0, in_sig))
            if not jnp.allclose(out, ref, atol=1e-5, rtol=1e-5):
                ok = False
                print("mismatch (shape=%s, tdtype=%s, in_sigmoid=%s): %r vs %r"
                      % (x.shape, y.dtype, in_sig, out, ref))

    if ok:
        print("KERNEL_OK")
</pallas_src>

<mosaic_0001>
module attributes {stable_mosaic.version = 11 : i64} {
  func.func @_dice_sums_kernel(%arg0: i32, %arg1: i32, %arg2: memref<32x512xf32, #tpu.memory_space<vmem>>, %arg3: memref<32x512xf32, #tpu.memory_space<vmem>>, %arg4: memref<8x512xf32, #tpu.memory_space<vmem>>, %arg5: memref<8x512xf32, #tpu.memory_space<vmem>>, %arg6: memref<8x512xf32, #tpu.memory_space<vmem>>, %arg7: memref<8x512xf32, #tpu.memory_space<vmem>>) attributes {dimension_semantics = [#tpu.dimension_semantics<parallel>, #tpu.dimension_semantics<arbitrary>], iteration_bounds = array<i64: 2, 1>, scalar_prefetch = 0 : i64, scratch_operands = 2 : i64, tpu.core_type = #tpu.core_type<tc>, window_params = [{transform_indices = @transform_0, window_bounds = array<i64: 32, 512>}, {transform_indices = @transform_1, window_bounds = array<i64: 32, 512>}, {transform_indices = @transform_2, window_bounds = array<i64: 8, 512>}, {transform_indices = @transform_3, window_bounds = array<i64: 8, 512>}]} {
    %c1_i32 = arith.constant 1 : i32
    %0 = arith.muli %arg0, %c1_i32 : i32
    %1 = arith.addi %0, %arg1 : i32
    %c0_i32 = arith.constant 0 : i32
    %2 = arith.cmpi eq, %arg1, %c0_i32 : i32
    %3 = arith.extui %2 : i1 to i32
    %c0_i32_0 = arith.constant 0 : i32
    %4 = arith.cmpi ne, %3, %c0_i32_0 : i32
    scf.if %4 {
      %cst = arith.constant 0.000000e+00 : f32
      %11 = vector.broadcast %cst : f32 to vector<8x512xf32>
      %c0 = arith.constant 0 : index
      %c0_4 = arith.constant 0 : index
      %12 = vector.load %arg6[%c0, %c0_4] : memref<8x512xf32, #tpu.memory_space<vmem>>, vector<8x512xf32>
      tpu.vector_store %arg6[%c0, %c0_4], %11 {strides = array<i32>} : memref<8x512xf32, #tpu.memory_space<vmem>>, vector<8x512xf32>,
      %cst_5 = arith.constant 0.000000e+00 : f32
      %13 = vector.broadcast %cst_5 : f32 to vector<8x512xf32>
      %c0_6 = arith.constant 0 : index
      %c0_7 = arith.constant 0 : index
      %14 = vector.load %arg7[%c0_6, %c0_7] : memref<8x512xf32, #tpu.memory_space<vmem>>, vector<8x512xf32>
      tpu.vector_store %arg7[%c0_6, %c0_7], %13 {strides = array<i32>} : memref<8x512xf32, #tpu.memory_space<vmem>>, vector<8x512xf32>,
    } else {
    }
    %c2_i32 = arith.constant 2 : i32
    %5 = arith.cmpi slt, %1, %c2_i32 : i32
    %6 = arith.extui %5 : i1 to i32
    %c0_i32_1 = arith.constant 0 : i32
    %7 = arith.cmpi ne, %6, %c0_i32_1 : i32
    scf.if %7 {
      %c0 = arith.constant 0 : index
      %c0_4 = arith.constant 0 : index
      %11 = vector.load %arg2[%c0, %c0_4] : memref<32x512xf32, #tpu.memory_space<vmem>>, vector<32x512xf32>
      %c0_5 = arith.constant 0 : index
      %c0_6 = arith.constant 0 : index
      %12 = vector.load %arg3[%c0_5, %c0_6] : memref<32x512xf32, #tpu.memory_space<vmem>>, vector<32x512xf32>
      %13 = arith.mulf %11, %12 : vector<32x512xf32>
      %14 = arith.addf %11, %12 : vector<32x512xf32>
      %c0_7 = arith.constant 0 : index
      %c0_8 = arith.constant 0 : index
      %15 = vector.load %arg6[%c0_7, %c0_8] : memref<8x512xf32, #tpu.memory_space<vmem>>, vector<8x512xf32>
      %16 = vector.shape_cast %13 : vector<32x512xf32> to vector<4x8x512xf32>
      %cst = arith.constant dense<0.000000e+00> : vector<8x512xf32>
      %17 = vector.multi_reduction <add>, %16, %cst [0] : vector<4x8x512xf32> to vector<8x512xf32>
      %18 = arith.addf %15, %17 : vector<8x512xf32>
      %c0_9 = arith.constant 0 : index
      %c0_10 = arith.constant 0 : index
      %19 = vector.load %arg6[%c0_9, %c0_10] : memref<8x512xf32, #tpu.memory_space<vmem>>, vector<8x512xf32>
      tpu.vector_store %arg6[%c0_9, %c0_10], %18 {strides = array<i32>} : memref<8x512xf32, #tpu.memory_space<vmem>>, vector<8x512xf32>,
      %c0_11 = arith.constant 0 : index
      %c0_12 = arith.constant 0 : index
      %20 = vector.load %arg7[%c0_11, %c0_12] : memref<8x512xf32, #tpu.memory_space<vmem>>, vector<8x512xf32>
      %21 = vector.shape_cast %14 : vector<32x512xf32> to vector<4x8x512xf32>
      %cst_13 = arith.constant dense<0.000000e+00> : vector<8x512xf32>
      %22 = vector.multi_reduction <add>, %21, %cst_13 [0] : vector<4x8x512xf32> to vector<8x512xf32>
      %23 = arith.addf %20, %22 : vector<8x512xf32>
      %c0_14 = arith.constant 0 : index
      %c0_15 = arith.constant 0 : index
      %24 = vector.load %arg7[%c0_14, %c0_15] : memref<8x512xf32, #tpu.memory_space<vmem>>, vector<8x512xf32>
      tpu.vector_store %arg7[%c0_14, %c0_15], %23 {strides = array<i32>} : memref<8x512xf32, #tpu.memory_space<vmem>>, vector<8x512xf32>,
    } else {
    }
    %c0_i32_2 = arith.constant 0 : i32
    %8 = arith.cmpi eq, %arg1, %c0_i32_2 : i32
    %9 = arith.extui %8 : i1 to i32
    %c0_i32_3 = arith.constant 0 : i32
    %10 = arith.cmpi ne, %9, %c0_i32_3 : i32
    scf.if %10 {
      %c0 = arith.constant 0 : index
      %c0_4 = arith.constant 0 : index
      %11 = vector.load %arg6[%c0, %c0_4] : memref<8x512xf32, #tpu.memory_space<vmem>>, vector<8x512xf32>
      %c0_5 = arith.constant 0 : index
      %c0_6 = arith.constant 0 : index
      %12 = vector.load %arg4[%c0_5, %c0_6] : memref<8x512xf32, #tpu.memory_space<vmem>>, vector<8x512xf32>
      tpu.vector_store %arg4[%c0_5, %c0_6], %11 {strides = array<i32>} : memref<8x512xf32, #tpu.memory_space<vmem>>, vector<8x512xf32>,
      %c0_7 = arith.constant 0 : index
      %c0_8 = arith.constant 0 : index
      %13 = vector.load %arg7[%c0_7, %c0_8] : memref<8x512xf32, #tpu.memory_space<vmem>>, vector<8x512xf32>
      %c0_9 = arith.constant 0 : index
      %c0_10 = arith.constant 0 : index
      %14 = vector.load %arg5[%c0_9, %c0_10] : memref<8x512xf32, #tpu.memory_space<vmem>>, vector<8x512xf32>
      tpu.vector_store %arg5[%c0_9, %c0_10], %13 {strides = array<i32>} : memref<8x512xf32, #tpu.memory_space<vmem>>, vector<8x512xf32>,
    } else {
    }
    return
  }
  func.func @transform_0(%arg0: i32, %arg1: i32) -> (i32, i32) {
    %c1_i32 = arith.constant 1 : i32
    %0 = arith.muli %arg0, %c1_i32 : i32
    %1 = arith.addi %0, %arg1 : i32
    %c1_i32_0 = arith.constant 1 : i32
    %2 = arith.minsi %1, %c1_i32_0 : i32
    %c0_i32 = arith.constant 0 : i32
    %c0_i32_1 = arith.constant 0 : i32
    return %2, %c0_i32 : i32, i32
  }
  func.func @transform_1(%arg0: i32, %arg1: i32) -> (i32, i32) {
    %c1_i32 = arith.constant 1 : i32
    %0 = arith.muli %arg0, %c1_i32 : i32
    %1 = arith.addi %0, %arg1 : i32
    %c1_i32_0 = arith.constant 1 : i32
    %2 = arith.minsi %1, %c1_i32_0 : i32
    %c0_i32 = arith.constant 0 : i32
    %c0_i32_1 = arith.constant 0 : i32
    return %2, %c0_i32 : i32, i32
  }
  func.func @transform_2(%arg0: i32, %arg1: i32) -> (i32, i32) {
    %c0_i32 = arith.constant 0 : i32
    %c0_i32_0 = arith.constant 0 : i32
    return %arg0, %c0_i32 : i32, i32
  }
  func.func @transform_3(%arg0: i32, %arg1: i32) -> (i32, i32) {
    %c0_i32 = arith.constant 0 : i32
    %c0_i32_0 = arith.constant 0 : i32
    return %arg0, %c0_i32 : i32, i32
  }
}

</mosaic_0001>

<bundles_post_ra>
// kernel: tpu_custom_call.1
= control target key start
LH: loop header
LB: loop body
LE: loop exit
PB: predicated region body
PF: predicated region fallthrough
CT: control target
= control target key end

     0   :  { %s1302_s0 = inlined_call_operand.hbm [shape: f32[64,512], index: 0, kind: input, shape index: {}]   ;;  %s1303_s1 = inlined_call_operand.hbm [shape: f32[64,512], index: 1, kind: input, shape index: {}]   ;;  %s1304_s2 = inlined_call_operand.hbm [shape: f32[16,512], index: 2, kind: output, shape index: {0}]   ;;  %s1305_s3 = inlined_call_operand.hbm [shape: f32[16,512], index: 3, kind: output, shape index: {1}]  }
   0x1   :  { %1312 = sst [smem:[#allocation18_spill]] %s1302_s0 }
   0x2   :  { %9 = vsyncpa [#allocation5], 0 }
   0x3   :  { %11 = vsyncpa [#allocation5 + $0x1], 0 }
   0x4   :  { %12 = vsyncpa [#allocation8], 0 }
   0x5   :  { %14 = vsyncpa [#allocation8 + $0x1], 0 }
   0x6   :  { %15 = vsyncpa [#allocation6], 0 }
   0x7   :  { %17 = vsyncpa [#allocation6 + $0x1], 0 }
   0x8   :  { %18 = vsyncpa [#allocation11], 0 }
   0x9   :  { %20 = vsyncpa [#allocation11 + $0x1], 0  ;;  %s957_s12 = smov 0   ;;  %s959_s13 = smov 0  }
   0xa   :  { %s961_s14 = smov 0   ;;  %s963_s15 = smov 0  }
   0xb   :  { %s965_s16 = smov 0   ;;  %s967_s17 = smov 0  }
   0xc   :  { %s969_s18 = smov 0   ;;  %s971_s19 = smov 0  }
   0xd   :  { %s973_s20 = smov 0  }
   0xe LB: > { %1313 = sst [smem:[#allocation16_spill]] %s924_s19  ;;  %s595_s21 = sadd.s32 4294967295, %s928_s20   ;;  %s928_s20 = sphi %s973_s20, %s26_s20   ;;  %s924_s19 = sphi %s971_s19, %s1329_s19   ;;  %s920_s18 = sphi %s969_s18, %s1328_s18   ;;  %s916_s17 = sphi %s967_s17, %s1335_s17   ;;  %s912_s16 = sphi %s965_s16, %s1334_s16   ;;  %s908_s15 = sphi %s963_s15, %s1333_s15   ;;  %s904_s14 = sphi %s961_s14, %s1332_s14   ;;  %s900_s13 = sphi %s959_s13, %s1331_s13   ;;  %s896_s12 = sphi %s957_s12, %s1330_s12  }
   0xf   : > { %s596_s22 = sadd.s32 4294967294, %s928_s20   ;;  %s38_s23 = sadd.s32 1, %s924_s19 }
  0x10   : > { %p43_p0 = scmp.lt.s32.totalorder %s924_s19, 1  ;;  %p40_p1 = scmp.ge.s32.totalorder %s38_s23, 2 }
  0x11   : > { %s51_s24 = sadd.s32 1, %s916_s17  ;;  %p58_p2 = scmp.ne.s32.totalorder %s916_s17, %s912_s16 }
  0x12   : > { %s1006_s25 = scalar_select %p43_p0, %s924_s19, 1 }
  0x13   : > { %s1337_s23 = smov (%p40_p1, %s38_s23), 0  ;;  %p59_p3 = scmp.eq.s32.totalorder %s928_s20, 0 }
  0x14   : > { %1314 = sst [smem:[#allocation17_spill]] %s1337_s23  ;;  %p46_p4 = scmp.lt.s32.totalorder %s1337_s23, 1 }
  0x15   : > { %p64_p5 = scmp.ne.s32.totalorder %s912_s16, %s908_s15  ;;  %p1015_p6 = por %p59_p3, %p58_p2 }
  0x16   : > { %p65_p7 = scmp.eq.s32.totalorder %s595_s21, 0  ;;  %s106_s29 = ssub.s32 %s924_s19, %s1337_s23 }
  0x17   : > { %s47_s27 = scalar_select %p46_p4, %s1337_s23, 1 }
  0x18   : > { %p1020_p8 = por %p65_p7, %p64_p5  ;;  %p107_p9 = scmp.eq.s32.totalorder %s106_s29, 0 }
  0x19   : > { %s48_s30 = ssub.s32 %s1006_s25, %s47_s27  ;;  %s109_s4 = sadd.s32 1, %s904_s14 }
  0x1a   : > { %s1316_s28 = scalar_select %p1020_p8, 1, 0 }
  0x1b   : > { %p49_p10 = scmp.eq.s32.totalorder %s48_s30, 0  ;;  %p119_p11 = scmp.ne.s32.totalorder %s904_s14, %s900_s13 }
  0x1c   : > { %s1029_s5 = scalar_select %p107_p9, %s904_s14, %s109_s4  }
  0x1d   : > { %s1032_s6 = scalar_select %p49_p10, %s916_s17, %s51_s24  }
  0x1e   : > { %p120_p12 = scmp.eq.s32.totalorder %s595_s21, 1  ;;  %p125_p13 = scmp.ne.s32.totalorder %s900_s13, %s896_s12 }
  0x1f   : > { %p126_p0 = scmp.eq.s32.totalorder %s596_s22, 1  ;;  %p649_p4 = scmp.lt.s32.totalorder %s928_s20, 2 }
  0x20   : > { %p1038_p1 = por %p120_p12, %p119_p11  ;;  %s1049_s9 = sand.u32 1, %s916_s17  }
  0x21   : > { %p1043_p3 = por %p126_p0, %p125_p13  ;;  %s1307_s10 = sshll.u32 %s1006_s25, 11 }
  0x22   : > { %s1317_s7 = scalar_select %p1038_p1, 1, 0 }
  0x23   : > { %s1318_s8 = scalar_select %p1043_p3, 1, 0 }
  0x24   : > { %s1306_s11 = sshll.u32 %s1049_s9, 7  ;;  %s1319_s0 = sld [smem:[#allocation18_spill]] }
  0x25   : > { %s176_s24 = scalar_lea.vmem [#allocation4], %s1306_s11  ;;  %p1064_p5 = pnand %p649_p4, %p1015_p6 }
  0x26   : > { %s187_s27 = sshll.u32 %s176_s24, 4  ;;  %s173_s30 = scalar_lea.sflag [#allocation5], %s1049_s9  ;;  %s1068_s27 = int_to_ptr.vmem [resolvable:$true] %s187_s27 }
  0x27   : > { %p728_p9 = pneg %p1064_p5 }
  0x2a   : > { %s1058_s22 = scalar_lea.hbm %s1319_s0, %s1307_s10  ;;  %s731_s26 = scalar_lea.hbm %s1319_s0, 4096 }
  0x2b   : > { %s726_s4 = scalar_lea.hbm %s1058_s22, 2048  ;;  %p732_p6 = scmp.lt.u32.totalorder %s1058_s22, %s1319_s0 }
  0x2c   : > { %p727_p7 = scmp.ne.s32.totalorder %s1058_s22, %s726_s4  ;;  %p733_p12 = scmp.lt.u32.totalorder %s731_s26, %s726_s4 }
  0x2d   : > { %p735_p0 = scmp.lt.u32.totalorder %s726_s4, %s1058_s22 }
  0x2e   : > { %p729_p10 = pnand %p728_p9, %p727_p7  ;;  %p734_p13 = por %p733_p12, %p732_p6 }
  0x30   : > { %p730_p11 = pneg %p729_p10  ;;  %p736_p4 = por %p735_p0, %p734_p13 }
  0x32   : > { %p737_p2 = pnand %p736_p4, %p730_p11 }
  0x34   : > { %740 = shalt.err (!%p737_p2)
}
  0x35   : > { %s741_s10 = scalar_lea.vmem %s1068_s27, 2048  ;;  %s930_s15 = smov [#allocation4]  }
  0x36   : > { %p742_p7 = scmp.ne.s32.totalorder %s1068_s27, %s741_s10  ;;  %s746_s21 = sshll.u32 %s930_s15, 4  ;;  %s747_s21 = int_to_ptr.vmem [resolvable:$false] %s746_s21 }
  0x37   : > { %s748_s11 = scalar_lea.vmem %s747_s21, 4096  ;;  %p749_p1 = scmp.lt.s32.totalorder %s1068_s27, %s747_s21 }
  0x38   : > { %p744_p10 = pnand %p742_p7, %p728_p9  ;;  %p750_p6 = scmp.lt.s32.totalorder %s748_s11, %s741_s10 }
  0x3a   : > { %p745_p3 = pneg %p744_p10  ;;  %p751_p12 = por %p750_p6, %p749_p1 }
  0x3c   : > { %p752_p13 = pnand %p751_p12, %p745_p3 }
  0x3e   : > { %755 = shalt.err (!%p752_p13)
}
  0x3f   : > { %s931_s4 = smov 512   ;;  %s932_s26 = smov 32  }
  0x40   : > { %638 = dma.hbm_to_vmem [thread:$0]  (!%p1064_p5), %s1058_s22, 2048, %s1068_s27, %s173_s30, %s931_s4, %s931_s4, %s932_s26  }
  0x41   : > { %p607_p1 = scmp.ge.s32.totalorder %s928_s20, 1  ;;  %p220_p2 = scmp.lt.s32.totalorder %s928_s20, 3 }
  0x42   : > { %s1322_s24 = sshll.u32 %s1006_s25, 11  ;;  %s1323_s0 = sshll.u32 %s1049_s9, 7 }
  0x43   : > { %p1103_p3 = pnand %p607_p1, %p220_p2  ;;  %s1112_s11 = scalar_lea.hbm %s1303_s1, %s1322_s24 }
  0x44   : > { %s201_s23 = scalar_lea.vmem [#allocation7], %s1323_s0  ;;  %s198_s22 = scalar_lea.sflag [#allocation8], %s1049_s9 }
  0x45   : > { %s212_s19 = sshll.u32 %s201_s23, 4  ;;  %s756_s27 = scalar_lea.hbm %s1112_s11, 2048  ;;  %s1116_s19 = int_to_ptr.vmem [resolvable:$true] %s212_s19 }
  0x46   : > { %p757_p11 = scmp.ne.s32.totalorder %s1112_s11, %s756_s27  ;;  %s761_s24 = scalar_lea.hbm %s1303_s1, 4096 }
  0x47   : > { %p762_p7 = scmp.lt.u32.totalorder %s1112_s11, %s1303_s1  ;;  %p763_p10 = scmp.lt.u32.totalorder %s761_s24, %s756_s27 }
  0x48   : > { %p759_p0 = pnand %p757_p11, %p728_p9  ;;  %p765_p12 = scmp.lt.u32.totalorder %s756_s27, %s1112_s11 }
  0x49   : > { %p764_p6 = por %p763_p10, %p762_p7 }
  0x4a   : > { %p760_p4 = pneg %p759_p0 }
  0x4b   : > { %p766_p13 = por %p765_p12, %p764_p6 }
  0x4d   : > { %p767_p1 = pnand %p766_p13, %p760_p4 }
  0x4f   : > { %770 = shalt.err (!%p767_p1)
}
  0x50   : > { %s771_s0 = scalar_lea.vmem %s1116_s19, 2048  ;;  %s933_s23 = smov [#allocation7]  }
  0x51   : > { %p772_p2 = scmp.ne.s32.totalorder %s1116_s19, %s771_s0  ;;  %s776_s25 = sshll.u32 %s933_s23, 4  ;;  %s777_s25 = int_to_ptr.vmem [resolvable:$false] %s776_s25 }
  0x52   : > { %s778_s30 = scalar_lea.vmem %s777_s25, 4096  ;;  %p779_p8 = scmp.lt.s32.totalorder %s1116_s19, %s777_s25 }
  0x53   : > { %p774_p11 = pnand %p772_p2, %p728_p9  ;;  %p780_p7 = scmp.lt.s32.totalorder %s778_s30, %s771_s0 }
  0x55   : > { %p775_p0 = pneg %p774_p11  ;;  %p781_p10 = por %p780_p7, %p779_p8 }
  0x57   : > { %p782_p6 = pnand %p781_p10, %p775_p0 }
  0x59   : > { %785 = shalt.err (!%p782_p6)
}
  0x5a   : > { %641 = dma.hbm_to_vmem [thread:$0]  (!%p1064_p5), %s1112_s11, 2048, %s1116_s19, %s198_s22, %s931_s4, %s931_s4, %s932_s26  }
  0x5b   : > { %224 = sbr.rel (%p1103_p3) target bundleno = 179 (0xb3), region = 28  ;;  %s226_s27 = sand.u32 (!%p1103_p3), 1, %s912_s16  }
  0x5c   : > { %s608_s24 = sshll.u32 (!%p1103_p3), %s226_s27, 7  ;;  %s227_s15 = scalar_lea.sflag (!%p1103_p3), [#allocation5], %s226_s27 }
  0x5d   : > { %s1150_s21 = scalar_lea.vmem (!%p1103_p3), [#allocation4], %s608_s24  ;;  %p1324_p8 = scmp.ne.s32.totalorder (!%p1103_p3), %s1316_s28, 0 }
  0x62   : > { %879 = dma.done.wait (%p1324_p8), %s227_s15, 2048  }
  0x63   : > { %881 = vsyncadd (%p1324_p8), %s227_s15, 4294965248  ;;  %s236_s9 = scalar_lea.sflag [#allocation8], %s226_s27  ;;  %s1156_s29 = scalar_lea.vmem [#allocation7], %s608_s24 }
  0x64   : > { %883 = dma.done.wait (%p1324_p8), %s236_s9, 2048  }
  0x65   : > { %885 = vsyncadd (%p1324_p8), %s236_s9, 4294965248  ;;  %s1163_s19 = sand.u32 1, %s900_s13   ;;  %v934_v0 = vmov 0.0   ;;  %p612_p5 = scmp.ge.s32.totalorder %s920_s18, 2 }
  0x66   : > { %s610_s4 = sshll.u32 %s1163_s19, 5  ;;  %285 = vst [vmem:[#allocation2] sm:$0xff] %v934_v0  ;;  %286 = vst [vmem:[#allocation2 + $0x8] sm:$0xff] %v934_v0  ;;  %v297_v1 = vld [vmem:[%s1150_s21] sm:$0xff] (!%p612_p5)  ;;  %v298_v14 = vld [vmem:[%s1150_s21 + $0x8] sm:$0xff] (!%p612_p5) }
  0x67   : > { %287 = vst [vmem:[#allocation2 + $0x10] sm:$0xff] %v934_v0  ;;  %288 = vst [vmem:[#allocation2 + $0x18] sm:$0xff] %v934_v0  ;;  %s1166_s26 = scalar_lea.vmem [#allocation9], %s610_s4  ;;  %s1168_s10 = scalar_lea.vmem [#allocation10], %s610_s4  ;;  %v301_v2 = vld [vmem:[%s1150_s21 + $0x20] sm:$0xff] (!%p612_p5)  ;;  %v302_v15 = vld [vmem:[%s1150_s21 + $0x28] sm:$0xff] (!%p612_p5) }
  0x68   : > { %289 = vst [vmem:[#allocation3] sm:$0xff] %v934_v0  ;;  %290 = vst [vmem:[#allocation3 + $0x8] sm:$0xff] %v934_v0  ;;  %296 = sbr.rel (%p612_p5) target bundleno = 130 (0x82), region = 44  ;;  %v305_v3 = vld [vmem:[%s1150_s21 + $0x40] sm:$0xff] (!%p612_p5)  ;;  %v306_v16 = vld [vmem:[%s1150_s21 + $0x48] sm:$0xff] (!%p612_p5) }
  0x69   : > { %291 = vst [vmem:[#allocation3 + $0x10] sm:$0xff] %v934_v0  ;;  %292 = vst [vmem:[#allocation3 + $0x18] sm:$0xff] %v934_v0  ;;  %v309_v4 = vld [vmem:[%s1150_s21 + $0x60] sm:$0xff] (!%p612_p5)  ;;  %v310_v20 = vld [vmem:[%s1150_s21 + $0x68] sm:$0xff] (!%p612_p5) }
  0x6a   : > { %v313_v5 = vld [vmem:[%s1156_s29] sm:$0xff] (!%p612_p5)  ;;  %v314_v21 = vld [vmem:[%s1156_s29 + $0x8] sm:$0xff] (!%p612_p5)  ;;  %v299_v35 = vld [vmem:[%s1150_s21 + $0x10] sm:$0xff] (!%p612_p5) }
  0x6b   : > { %v317_v6 = vld [vmem:[%s1156_s29 + $0x20] sm:$0xff] (!%p612_p5)  ;;  %v329_v9 = vmul.f32 (!%p612_p5), %v313_v5, %v297_v1  ;;  %v345_v11 = vadd.f32 (!%p612_p5), %v313_v5, %v297_v1  ;;  %v318_v22 = vld [vmem:[%s1156_s29 + $0x28] sm:$0xff] (!%p612_p5)  ;;  %v330_v28 = vmul.f32 (!%p612_p5), %v314_v21, %v298_v14  ;;  %v346_v30 = vadd.f32 (!%p612_p5), %v314_v21, %v298_v14  ;;  %v303_v36 = vld [vmem:[%s1150_s21 + $0x30] sm:$0xff] (!%p612_p5) }
  0x6c   : > { %v321_v7 = vld [vmem:[%s1156_s29 + $0x40] sm:$0xff] (!%p612_p5)  ;;  %v333_v10 = vmul.f32 (!%p612_p5), %v317_v6, %v301_v2  ;;  %v349_v12 = vadd.f32 (!%p612_p5), %v317_v6, %v301_v2  ;;  %v322_v26 = vld [vmem:[%s1156_s29 + $0x48] sm:$0xff] (!%p612_p5)  ;;  %v334_v29 = vmul.f32 (!%p612_p5), %v318_v22, %v302_v15  ;;  %v350_v31 = vadd.f32 (!%p612_p5), %v318_v22, %v302_v15  ;;  %v307_v37 = vld [vmem:[%s1150_s21 + $0x50] sm:$0xff] (!%p612_p5) }
  0x6d   : > { %v325_v8 = vld [vmem:[%s1156_s29 + $0x60] sm:$0xff] (!%p612_p5)  ;;  %v337_v13 = vmul.f32 (!%p612_p5), %v321_v7, %v305_v3  ;;  %v353_v17 = vadd.f32 (!%p612_p5), %v321_v7, %v305_v3  ;;  %v326_v27 = vld [vmem:[%s1156_s29 + $0x68] sm:$0xff] (!%p612_p5)  ;;  %v338_v33 = vmul.f32 (!%p612_p5), %v322_v26, %v306_v16  ;;  %v311_v40 = vld [vmem:[%s1150_s21 + $0x70] sm:$0xff] (!%p612_p5)  ;;  %v354_v43 = vadd.f32 (!%p612_p5), %v322_v26, %v306_v16 }
  0x6e   : > { %v341_v18 = vmul.f32 (!%p612_p5), %v325_v8, %v309_v4  ;;  %v365_v19 = vadd.f32 (!%p612_p5), %v333_v10, %v329_v9  ;;  %v357_v23 = vadd.f32 (!%p612_p5), %v325_v8, %v309_v4  ;;  %v389_v24 = vadd.f32 (!%p612_p5), %v349_v12, %v345_v11  ;;  %v361_v25 = vld [vmem:[#allocation2] sm:$0xff] (!%p612_p5)  ;;  %v315_v41 = vld [vmem:[%s1156_s29 + $0x10] sm:$0xff] (!%p612_p5)  ;;  %v362_v47 = vld [vmem:[#allocation2 + $0x8] sm:$0xff] (!%p612_p5) }
  0x6f   : > { %v342_v34 = vmul.f32 %v326_v27, %v310_v20  ;;  %v368_v39 = vadd.f32 %v334_v29, %v330_v28  ;;  %v319_v42 = vld [vmem:[%s1156_s29 + $0x30] sm:$0xff]  ;;  %v358_v44 = vadd.f32 %v326_v27, %v310_v20  ;;  %v392_v45 = vadd.f32 %v350_v31, %v346_v30  ;;  %v300_v56 = vld [vmem:[%s1150_s21 + $0x18] sm:$0xff]  ;;  %v385_v12 = vld [vmem:[#allocation3] sm:$0xff] }
  0x70   : > { %v366_v32 = vadd.f32 %v365_v19, %v337_v13  ;;  %v390_v38 = vadd.f32 %v389_v24, %v353_v17  ;;  %v323_v48 = vld [vmem:[%s1156_s29 + $0x50] sm:$0xff]  ;;  %v331_v50 = vmul.f32 %v315_v41, %v299_v35  ;;  %v335_v51 = vmul.f32 %v319_v42, %v303_v36  ;;  %v304_v57 = vld [vmem:[%s1150_s21 + $0x38] sm:$0xff]  ;;  %v386_v13 = vld [vmem:[#allocation3 + $0x8] sm:$0xff] }
  0x71   : > { %v327_v49 = vld [vmem:[%s1156_s29 + $0x70] sm:$0xff]  ;;  %v369_v53 = vadd.f32 %v368_v39, %v338_v33  ;;  %v339_v54 = vmul.f32 %v323_v48, %v307_v37  ;;  %v308_v58 = vld [vmem:[%s1150_s21 + $0x58] sm:$0xff]  ;;  %v393_v59 = vadd.f32 %v392_v45, %v354_v43  ;;  %v347_v1 = vadd.f32 %v315_v41, %v299_v35 }
  0x72   : > { %v367_v46 = vadd.f32 %v366_v32, %v341_v18  ;;  %v391_v52 = vadd.f32 %v390_v38, %v357_v23  ;;  %v343_v55 = vmul.f32 %v327_v49, %v311_v40  ;;  %v371_v61 = vadd.f32 %v335_v51, %v331_v50  ;;  %v312_v62 = vld [vmem:[%s1150_s21 + $0x78] sm:$0xff]  ;;  %v363_v16 = vld [vmem:[#allocation2 + $0x10] sm:$0xff] }
  0x73   : > { %v316_v63 = vld [vmem:[%s1156_s29 + $0x18] sm:$0xff]  ;;  %v351_v2 = vadd.f32 %v319_v42, %v303_v36  ;;  %v370_v3 = vadd.f32 %v369_v53, %v342_v34  ;;  %v394_v8 = vadd.f32 %v393_v59, %v358_v44  ;;  %v355_v14 = vadd.f32 %v323_v48, %v307_v37  ;;  %v387_v31 = vld [vmem:[#allocation3 + $0x10] sm:$0xff] }
  0x74   : > { %v377_v60 = vadd.f32 %v367_v46, %v361_v25  ;;  %v320_v0 = vld [vmem:[%s1156_s29 + $0x38] sm:$0xff]  ;;  %v332_v6 = vmul.f32 %v316_v63, %v300_v56  ;;  %v372_v9 = vadd.f32 %v371_v61, %v339_v54  ;;  %v401_v18 = vadd.f32 %v391_v52, %v385_v12 }
  0x75   : > { %v324_v4 = vld [vmem:[%s1156_s29 + $0x58] sm:$0xff]  ;;  %v336_v7 = vmul.f32 %v320_v0, %v304_v57  ;;  %v378_v15 = vadd.f32 %v370_v3, %v362_v47  ;;  %v402_v19 = vadd.f32 %v394_v8, %v386_v13  ;;  %v359_v21 = vadd.f32 %v327_v49, %v311_v40 }
  0x76   : > { %v328_v5 = vld [vmem:[%s1156_s29 + $0x78] sm:$0xff]  ;;  %381 = vst [vmem:[#allocation2] sm:$0xff] %v377_v60  ;;  %v340_v10 = vmul.f32 %v324_v4, %v308_v58  ;;  %v373_v20 = vadd.f32 %v372_v9, %v343_v55  ;;  %v395_v22 = vadd.f32 %v351_v2, %v347_v1  ;;  %v348_v23 = vadd.f32 %v316_v63, %v300_v56 }
  0x77   : > { %v344_v11 = vmul.f32 %v328_v5, %v312_v62  ;;  %v374_v17 = vadd.f32 %v336_v7, %v332_v6  ;;  %382 = vst [vmem:[#allocation2 + $0x8] sm:$0xff] %v378_v15  ;;  %405 = vst [vmem:[#allocation3] sm:$0xff] %v401_v18  ;;  %v352_v25 = vadd.f32 %v320_v0, %v304_v57  ;;  %v364_v28 = vld [vmem:[#allocation2 + $0x18] sm:$0xff] }
  0x78   : > { %406 = vst [vmem:[#allocation3 + $0x8] sm:$0xff] %v402_v19  ;;  %v356_v26 = vadd.f32 %v324_v4, %v308_v58  ;;  %v379_v27 = vadd.f32 %v373_v20, %v363_v16  ;;  %v396_v29 = vadd.f32 %v395_v22, %v355_v14  ;;  %v360_v32 = vadd.f32 %v328_v5, %v312_v62  ;;  %v388_v38 = vld [vmem:[#allocation3 + $0x18] sm:$0xff] }
  0x79   : > { %v375_v24 = vadd.f32 %v374_v17, %v340_v10  ;;  %v398_v33 = vadd.f32 %v352_v25, %v348_v23 }
  0x7a   : > { %383 = vst [vmem:[#allocation2 + $0x10] sm:$0xff] %v379_v27  ;;  %v397_v34 = vadd.f32 %v396_v29, %v359_v21 }
  0x7b   : > { %v376_v30 = vadd.f32 %v375_v24, %v344_v11  ;;  %v399_v36 = vadd.f32 %v398_v33, %v356_v26 }
  0x7c   : > { %v403_v37 = vadd.f32 %v397_v34, %v387_v31 }
  0x7d   : > { %v380_v35 = vadd.f32 %v376_v30, %v364_v28  ;;  %v400_v39 = vadd.f32 %v399_v36, %v360_v32 }
  0x7e   : > { %407 = vst [vmem:[#allocation3 + $0x10] sm:$0xff] %v403_v37 }
  0x7f   : > { %384 = vst [vmem:[#allocation2 + $0x18] sm:$0xff] %v380_v35  ;;  %v404_v40 = vadd.f32 %v400_v39, %v388_v38 }
  0x81   : > { %408 = vst [vmem:[#allocation3 + $0x18] sm:$0xff] %v404_v40 }
  0x82 PF: > { %v412_v41 = vld [vmem:[#allocation2] sm:$0xff]  ;;  %v413_v42 = vld [vmem:[#allocation2 + $0x8] sm:$0xff]  ;;  %v414_v43 = vld [vmem:[#allocation2 + $0x10] sm:$0xff]  ;;  %s625_s28 = sshll.u32 %s920_s18, 9  ;;  %s448_s23 = sshll.u32 %s1166_s26, 4  ;;  %s1218_s23 = int_to_ptr.vmem [resolvable:$true] %s448_s23 }
  0x83   : > { %416 = vst [vmem:[%s1166_s26] sm:$0xff] %v412_v41  ;;  %417 = vst [vmem:[%s1166_s26 + $0x8] sm:$0xff] %v413_v42  ;;  %v420_v45 = vld [vmem:[#allocation3] sm:$0xff]  ;;  %v421_v46 = vld [vmem:[#allocation3 + $0x8] sm:$0xff]  ;;  %s1212_s0 = scalar_lea.hbm %s1304_s2, %s625_s28  ;;  %s429_s25 = scalar_lea.sflag [#allocation6], %s1163_s19 }
  0x84   : > { %418 = vst [vmem:[%s1166_s26 + $0x10] sm:$0xff] %v414_v43  ;;  %424 = vst [vmem:[%s1168_s10] sm:$0xff] %v420_v45  ;;  %s786_s30 = scalar_lea.vmem %s1218_s23, 512  ;;  %p1325_p3 = scmp.ne.s32.totalorder %s1317_s7, 0 }
  0x85   : > { %425 = vst [vmem:[%s1168_s10 + $0x8] sm:$0xff] %v421_v46  ;;  %v422_v47 = vld [vmem:[#allocation3 + $0x10] sm:$0xff]  ;;  %p787_p9 = scmp.ne.s32.totalorder %s1218_s23, %s786_s30  ;;  %s935_s27 = smov [#allocation9]  }
  0x86   : > { %v415_v44 = vld [vmem:[#allocation2 + $0x18] sm:$0xff]  ;;  %426 = vst [vmem:[%s1168_s10 + $0x10] sm:$0xff] %v422_v47  ;;  %s790_s24 = sshll.u32 %s935_s27, 4  ;;  %s791_s24 = int_to_ptr.vmem [resolvable:$false] %s790_s24 }
  0x87   : > { %419 = vst [vmem:[%s1166_s26 + $0x18] sm:$0xff] %v415_v44  ;;  %p788_p4 = pnand %p787_p9, %p1325_p3  ;;  %s792_s15 = scalar_lea.vmem %s791_s24, 1024 }
  0x88   : > { %v423_v48 = vld [vmem:[#allocation3 + $0x18] sm:$0xff]  ;;  %p793_p13 = scmp.lt.s32.totalorder %s1218_s23, %s791_s24  ;;  %p794_p1 = scmp.lt.s32.totalorder %s792_s15, %s786_s30 }
  0x89   : > { %427 = vst [vmem:[%s1168_s10 + $0x18] sm:$0xff] %v423_v48  ;;  %p789_p12 = pneg %p788_p4 }
  0x8a   : > { %p795_p2 = por %p794_p1, %p793_p13 }
  0x8c   : > { %p796_p11 = pnand %p795_p2, %p789_p12 }
  0x8e   : > { %799 = shalt.err (!%p796_p11)
}
  0x8f   : > { %s800_s21 = scalar_lea.hbm %s1212_s0, 512  ;;  %s804_s4 = scalar_lea.hbm %s1304_s2, 1024 }
  0x90   : > { %p801_p0 = scmp.ne.s32.totalorder %s1212_s0, %s800_s21  ;;  %p805_p6 = scmp.lt.u32.totalorder %s1212_s0, %s1304_s2 }
  0x91   : > { %p806_p8 = scmp.lt.u32.totalorder %s804_s4, %s800_s21  ;;  %p808_p9 = scmp.lt.u32.totalorder %s800_s21, %s1212_s0 }
  0x92   : > { %p802_p7 = pnand %p801_p0, %p1325_p3 }
  0x93   : > { %p807_p5 = por %p806_p8, %p805_p6 }
  0x94   : > { %p803_p10 = pneg %p802_p7 }
  0x95   : > { %p809_p4 = por %p808_p9, %p807_p5 }
  0x97   : > { %p810_p12 = pnand %p809_p4, %p803_p10 }
  0x99   : > { %813 = shalt.err (!%p810_p12)
}
  0x9a   : > { %631 = dma.vmem_to_hbm [thread:$0]  (%p1325_p3), %s1218_s23, 512, %s1212_s0, %s429_s25  }
  0x9b   : > { %s1249_s27 = scalar_lea.hbm %s1305_s3, %s625_s28  ;;  %s462_s24 = sshll.u32 %s1168_s10, 4  ;;  %s463_s24 = int_to_ptr.vmem [resolvable:$true] %s462_s24 }
  0x9c   : > { %s434_s15 = scalar_lea.sflag [#allocation11], %s1163_s19  ;;  %s814_s21 = scalar_lea.vmem %s463_s24, 512 }
  0x9d   : > { %p815_p13 = scmp.ne.s32.totalorder %s463_s24, %s814_s21  ;;  %s936_s9 = smov [#allocation10]  }
  0x9e   : > { %s818_s29 = sshll.u32 %s936_s9, 4  ;;  %s819_s29 = int_to_ptr.vmem [resolvable:$false] %s818_s29 }
  0x9f   : > { %p816_p1 = pnand %p815_p13, %p1325_p3  ;;  %s820_s4 = scalar_lea.vmem %s819_s29, 1024 }
  0xa0   : > { %p821_p11 = scmp.lt.s32.totalorder %s463_s24, %s819_s29  ;;  %p822_p0 = scmp.lt.s32.totalorder %s820_s4, %s814_s21 }
  0xa1   : > { %p817_p2 = pneg %p816_p1 }
  0xa2   : > { %p823_p7 = por %p822_p0, %p821_p11 }
  0xa4   : > { %p824_p10 = pnand %p823_p7, %p817_p2 }
  0xa6   : > { %827 = shalt.err (!%p824_p10)
}
  0xa7   : > { %s828_s18 = scalar_lea.hbm %s1249_s27, 512  ;;  %s832_s28 = scalar_lea.hbm %s1305_s3, 1024 }
  0xa8   : > { %p829_p6 = scmp.ne.s32.totalorder %s1249_s27, %s828_s18  ;;  %p833_p9 = scmp.lt.u32.totalorder %s1249_s27, %s1305_s3 }
  0xa9   : > { %p834_p4 = scmp.lt.u32.totalorder %s832_s28, %s828_s18  ;;  %p836_p13 = scmp.lt.u32.totalorder %s828_s18, %s1249_s27 }
  0xaa   : > { %p830_p8 = pnand %p829_p6, %p1325_p3 }
  0xab   : > { %p835_p12 = por %p834_p4, %p833_p9 }
  0xac   : > { %p831_p5 = pneg %p830_p8 }
  0xad   : > { %p837_p1 = por %p836_p13, %p835_p12 }
  0xaf   : > { %p838_p2 = pnand %p837_p1, %p831_p5 }
  0xb1   : > { %841 = shalt.err (!%p838_p2)
}
  0xb2   : > { %632 = dma.vmem_to_hbm [thread:$0]  (%p1325_p3), %s463_s24, 512, %s1249_s27, %s434_s15  }
  0xb3 PF: > { %s474_s25 = sand.u32 1, %s896_s12   ;;  %p1326_p11 = scmp.ne.s32.totalorder %s1318_s8, 0 }
  0xb4   : > { %p1327_p0 = scmp.ge.s32.totalorder %s928_s20, 2  ;;  %s475_s26 = scalar_lea.sflag [#allocation6], %s474_s25 }
  0xb6   : > { %p643_p7 = pnand %p1327_p0, %p1326_p11 }
  0xb8   : > { %887 = dma.done.wait (!%p643_p7), %s475_s26, 512  }
  0xb9   : > { %889 = vsyncadd (!%p643_p7), %s475_s26, 4294966784  ;;  %s484_s11 = scalar_lea.sflag [#allocation11], %s474_s25 }
  0xba   : > { %891 = dma.done.wait (!%p643_p7), %s484_s11, 512  }
  0xbb   : > { %893 = vsyncadd (!%p643_p7), %s484_s11, 4294966784  ;;  %s26_s20 = sadd.s32 1, %s928_s20   ;;  %s1328_s18 = sld [smem:[#allocation16_spill]] }
  0xbc   : > { %p23_p10 = scmp.ge.s32.totalorder %s26_s20, 4   ;;  %s1329_s19 = sld [smem:[#allocation17_spill]] }
  0xbd   : > { %s1330_s12 = smov %s900_s13  ;;  %s1331_s13 = smov %s904_s14 }
  0xbe   : > { %s1332_s14 = smov %s1029_s5  ;;  %s1333_s15 = smov %s912_s16 }
  0xbf   : > { %s1334_s16 = smov %s916_s17  ;;  %s1335_s17 = smov %s1032_s6 }
  0xc0   :  { %25 = sbr.rel (!%p23_p10) target bundleno = 14 (0xe), region = 115 }
  0xc7   :  { %489 = vsyncpa [#allocation5], 1 }
  0xc8   :  { %491 = vsyncpa [#allocation5 + $0x1], 1 }
  0xc9   :  { %492 = vsyncpa [#allocation8], 1 }
  0xca   :  { %494 = vsyncpa [#allocation8 + $0x1], 1 }
  0xcb   :  { %495 = vsyncpa [#allocation6], 1 }
  0xcc   :  { %497 = vsyncpa [#allocation6 + $0x1], 1 }
  0xcd   :  { %498 = vsyncpa [#allocation11], 1 }
  0xce   :  { %500 = vsyncpa [#allocation11 + $0x1], 1 }

</bundles_post_ra>
